<compile_context>
chip_gen: v6e
topology: v6e:2x2x1
jax: 0.10.0
libtpu: 0.0.40
codegen_flags: <defaults>
</compile_context>

<pallas_src>
import jax
import jax.numpy as jnp
from jax.experimental import pallas as pl
from jax.experimental.pallas import tpu as pltpu


def vae_encoder_kernel(x_ref, w1_ref, b1_ref, w23_ref, b23_ref, eps_ref,
                       z_ref, kl_ref):
    # x: [B, D] bf16, w1: [D, H] bf16, b1: [1, H] f32,
    # w23: [H, 2L] bf16 (= [w2 | w3]), b23: [1, 2L] f32, eps: [B, L] f32.
    L = eps_ref.shape[-1]

    # linear1 (bf16 MXU, f32 accumulate) + bias + ReLU (f32 on VPU)
    h = jnp.dot(x_ref[...], w1_ref[...], preferred_element_type=jnp.float32)
    h = jnp.maximum(h + b1_ref[...], 0.0)

    # Fused linear2/linear3: one [H, 2L] projection, then slice.
    ml = jnp.dot(h.astype(jnp.bfloat16), w23_ref[...],
                 preferred_element_type=jnp.float32) + b23_ref[...]
    mu = ml[:, :L]
    logsig = ml[:, L:]
    sigma = jnp.exp(logsig)                      # EUP, f32

    # Reparameterization: z = mu + sigma * eps
    z_ref[...] = (mu + sigma * eps_ref[...]).astype(z_ref.dtype)

    # KL = sum(sigma^2 + mu^2 - log(sigma) - 1/2); log(sigma) == logsig.
    # Scalar goes straight to SMEM (no masked 1-element vector store).
    kl_ref[0, 0] = jnp.sum(sigma * sigma + mu * mu - logsig - 0.5)


def pack_params(params):
    """Pack nn.Linear-style params for the kernel (done once, off hot path)."""
    w1, b1, w2, b2, w3, b3 = params
    w23 = jnp.concatenate([w2, w3], axis=1)          # [H, 2L]
    b23 = jnp.concatenate([b2, b3], axis=1)          # [1, 2L]
    return (w1.astype(jnp.bfloat16), b1.astype(jnp.float32),
            w23.astype(jnp.bfloat16), b23.astype(jnp.float32))


def variational_encoder_forward(x_nchw, packed_params, eps):
    """x_nchw: [B, C, H, W]. Returns (z [B, latent], kl scalar)."""
    B = x_nchw.shape[0]
    x_flat = x_nchw.reshape(B, -1).astype(jnp.bfloat16)   # flatten(start_dim=1)

    w1, b1, w23, b23 = packed_params
    latent = eps.shape[1]

    # Guard the "everything fits in one VMEM block" assumption (v7x has only
    # 64 MiB physical / 32 MiB scoped-default VMEM, and BlockSpec inputs are
    # double-buffered).
    # TODO(synk): add a K-tiled grid (tile_k=256 on v6e/v7x, 128 on v5e) with a
    # pl.when-initialized f32 accumulator if input_dims/hidden_dims grow to
    # realistic VAE sizes.
    total_bytes = sum(int(a.size) * a.dtype.itemsize
                      for a in (x_flat, w1, b1, w23, b23, eps))
    assert total_bytes < 24 * 1024 * 1024, (
        "operands too large for the single-block VMEM kernel; add K tiling")

    vmem = pl.BlockSpec(memory_space=pltpu.MemorySpace.VMEM)
    smem = pl.BlockSpec(memory_space=pltpu.MemorySpace.SMEM)

    z, kl = pl.pallas_call(
        vae_encoder_kernel,
        out_shape=(
            jax.ShapeDtypeStruct((B, latent), jnp.float32),
            jax.ShapeDtypeStruct((1, 1), jnp.float32),
        ),
        in_specs=[vmem] * 6,
        out_specs=(vmem, smem),
    )(x_flat, w1, b1, w23, b23, eps)

    return z, kl[0, 0]


def init_params(key, input_dims, hidden_dims, latent_dims):
    """Kaiming-uniform-ish init matching nn.Linear shapes.

    PyTorch stores Linear weights as [out, in]; we keep them [in, out] so the
    kernel does plain x @ W."""
    ks = jax.random.split(key, 6)

    def lin(kw, kb, fan_in, fan_out):
        bound = 1.0 / jnp.sqrt(fan_in)
        w = jax.random.uniform(kw, (fan_in, fan_out), jnp.float32, -bound, bound)
        b = jax.random.uniform(kb, (1, fan_out), jnp.float32, -bound, bound)
        return w, b

    w1, b1 = lin(ks[0], ks[1], input_dims, hidden_dims)
    w2, b2 = lin(ks[2], ks[3], hidden_dims, latent_dims)
    w3, b3 = lin(ks[4], ks[5], hidden_dims, latent_dims)
    return (w1, b1, w2, b2, w3, b3)


if __name__ == "__main__":
    # Small shapes consistent with the module: x is [B, C, H, W],
    # input_dims = C*H*W, hidden_dims, latent_dims.
    B, C, H, W = 2, 4, 16, 16
    input_dims = C * H * W          # 1024
    hidden_dims = 32
    latent_dims = 8

    key = jax.random.PRNGKey(0)
    k_x, k_eps, k_params = jax.random.split(key, 3)

    x = jax.random.normal(k_x, (B, C, H, W), jnp.float32)
    # N(0,1) sample for the reparameterization trick, drawn deterministically
    # outside the kernel (stand-in for torch.distributions.Normal.sample).
    eps = jax.random.normal(k_eps, (B, latent_dims), jnp.float32)

    params = init_params(k_params, input_dims, hidden_dims, latent_dims)
    packed = pack_params(params)

    fwd = jax.jit(variational_encoder_forward)
    z, kl = fwd(x, packed, eps)
    jax.block_until_ready((z, kl))

    # Pure-JAX reference with the SAME bf16 matmul operands / f32 accumulation.
    w1b, b1f, w23b, b23f = packed
    xb = x.reshape(B, -1).astype(jnp.bfloat16)
    h_ref = jnp.maximum(
        jnp.dot(xb, w1b, preferred_element_type=jnp.float32) + b1f, 0.0)
    ml_ref = jnp.dot(h_ref.astype(jnp.bfloat16), w23b,
                     preferred_element_type=jnp.float32) + b23f
    mu_ref = ml_ref[:, :latent_dims]
    logsig_ref = ml_ref[:, latent_dims:]
    sig_ref = jnp.exp(logsig_ref)
    z_ref = mu_ref + sig_ref * eps
    kl_ref = jnp.sum(sig_ref ** 2 + mu_ref ** 2 - logsig_ref - 0.5)

    assert jnp.allclose(z, z_ref, atol=1e-3, rtol=1e-3), (z, z_ref)
    assert jnp.allclose(kl, kl_ref, atol=1e-2, rtol=1e-3), (kl, kl_ref)

    print("KERNEL_OK")
</pallas_src>

<mosaic_0001>
module attributes {stable_mosaic.version = 11 : i64} {
  func.func @vae_encoder_kernel(%arg0: memref<2x1024xbf16, #tpu.memory_space<vmem>>, %arg1: memref<1024x32xbf16, #tpu.memory_space<vmem>>, %arg2: memref<1x32xf32, #tpu.memory_space<vmem>>, %arg3: memref<32x16xbf16, #tpu.memory_space<vmem>>, %arg4: memref<1x16xf32, #tpu.memory_space<vmem>>, %arg5: memref<2x8xf32, #tpu.memory_space<vmem>>, %arg6: memref<2x8xf32, #tpu.memory_space<vmem>>, %arg7: memref<1x1xf32, #tpu.memory_space<smem>>) attributes {dimension_semantics = [], scalar_prefetch = 0 : i64, scratch_operands = 0 : i64, tpu.core_type = #tpu.core_type<tc>} {
    %c0 = arith.constant 0 : index
    %c0_0 = arith.constant 0 : index
    %0 = vector.load %arg0[%c0, %c0_0] : memref<2x1024xbf16, #tpu.memory_space<vmem>>, vector<2x1024xbf16>
    %c0_1 = arith.constant 0 : index
    %c0_2 = arith.constant 0 : index
    %1 = vector.load %arg1[%c0_1, %c0_2] : memref<1024x32xbf16, #tpu.memory_space<vmem>>, vector<1024x32xbf16>
    %cst = arith.constant dense<0.000000e+00> : vector<2x32xf32>
    %2 = tpu.matmul %0, %1, %cst {dimension_numbers = #tpu.dot_dimension_numbers<[1], [0], [0], [1], [0, 0, 1, 1], [], []>} : vector<2x1024xbf16>, vector<1024x32xbf16>, vector<2x32xf32> -> vector<2x32xf32>
    %c0_3 = arith.constant 0 : index
    %c0_4 = arith.constant 0 : index
    %3 = vector.load %arg2[%c0_3, %c0_4] : memref<1x32xf32, #tpu.memory_space<vmem>>, vector<1x32xf32>
    %4 = vector.broadcast %3 : vector<1x32xf32> to vector<2x32xf32>
    %5 = arith.addf %2, %4 : vector<2x32xf32>
    %cst_5 = arith.constant 0.000000e+00 : f32
    %6 = vector.broadcast %cst_5 : f32 to vector<2x32xf32>
    %7 = arith.maximumf %5, %6 : vector<2x32xf32>
    %8 = arith.truncf %7 : vector<2x32xf32> to vector<2x32xbf16>
    %c0_6 = arith.constant 0 : index
    %c0_7 = arith.constant 0 : index
    %9 = vector.load %arg3[%c0_6, %c0_7] : memref<32x16xbf16, #tpu.memory_space<vmem>>, vector<32x16xbf16>
    %cst_8 = arith.constant dense<0.000000e+00> : vector<2x16xf32>
    %10 = tpu.matmul %8, %9, %cst_8 {dimension_numbers = #tpu.dot_dimension_numbers<[1], [0], [0], [1], [0, 0, 1, 1], [], []>} : vector<2x32xbf16>, vector<32x16xbf16>, vector<2x16xf32> -> vector<2x16xf32>
    %c0_9 = arith.constant 0 : index
    %c0_10 = arith.constant 0 : index
    %11 = vector.load %arg4[%c0_9, %c0_10] : memref<1x16xf32, #tpu.memory_space<vmem>>, vector<1x16xf32>
    %12 = vector.broadcast %11 : vector<1x16xf32> to vector<2x16xf32>
    %13 = arith.addf %10, %12 : vector<2x16xf32>
    %14 = vector.extract_strided_slice %13 {offsets = [0, 0], sizes = [2, 8], strides = [1, 1]} : vector<2x16xf32> to vector<2x8xf32>
    %15 = vector.extract_strided_slice %13 {offsets = [0, 8], sizes = [2, 8], strides = [1, 1]} : vector<2x16xf32> to vector<2x8xf32>
    %16 = math.exp %15 : vector<2x8xf32>
    %c0_11 = arith.constant 0 : index
    %c0_12 = arith.constant 0 : index
    %17 = vector.load %arg5[%c0_11, %c0_12] : memref<2x8xf32, #tpu.memory_space<vmem>>, vector<2x8xf32>
    %18 = arith.mulf %16, %17 : vector<2x8xf32>
    %19 = arith.addf %14, %18 : vector<2x8xf32>
    %c0_13 = arith.constant 0 : index
    %c0_14 = arith.constant 0 : index
    %20 = vector.load %arg6[%c0_13, %c0_14] : memref<2x8xf32, #tpu.memory_space<vmem>>, vector<2x8xf32>
    tpu.vector_store %arg6[%c0_13, %c0_14], %19 {strides = array<i32>} : memref<2x8xf32, #tpu.memory_space<vmem>>, vector<2x8xf32>,
    %21 = arith.mulf %16, %16 : vector<2x8xf32>
    %22 = arith.mulf %14, %14 : vector<2x8xf32>
    %23 = arith.addf %21, %22 : vector<2x8xf32>
    %24 = arith.subf %23, %15 : vector<2x8xf32>
    %cst_15 = arith.constant 5.000000e-01 : f32
    %25 = vector.broadcast %cst_15 : f32 to vector<2x8xf32>
    %26 = arith.subf %24, %25 : vector<2x8xf32>
    %27 = vector.shape_cast %26 : vector<2x8xf32> to vector<1x2x8xf32>
    %cst_16 = arith.constant dense<0.000000e+00> : vector<1xf32>
    %28 = vector.multi_reduction <add>, %27, %cst_16 [1, 2] : vector<1x2x8xf32> to vector<1xf32>
    %29 = vector.shape_cast %28 : vector<1xf32> to vector<1x1x1xf32>
    %30 = vector.extract %29[0, 0, 0] : f32 from vector<1x1x1xf32>
    %c0_17 = arith.constant 0 : index
    %c0_18 = arith.constant 0 : index
    %31 = memref.load %arg7[%c0_17, %c0_18] : memref<1x1xf32, #tpu.memory_space<smem>>
    memref.store %30, %arg7[%c0_17, %c0_18] : memref<1x1xf32, #tpu.memory_space<smem>>
    return
  }
}

</mosaic_0001>

<bundles_post_ra>
// kernel: variational_encoder_forward.1
= control target key start
LH: loop header
LB: loop body
LE: loop exit
PB: predicated region body
PF: predicated region fallthrough
CT: control target
= control target key end

     0   :  { %13 = vsyncpa [#allocation3], 0  ;;  %v169_v28 = vlaneseq  ;;  %v1181_v36 = vmov 1966171168   ;;  %s1459_s0 = inlined_call_operand.vmem [shape: bf16[2,1024], index: 0, kind: input, shape index: {}]   ;;  %s1460_s1 = inlined_call_operand.vmem [shape: bf16[1024,32], index: 1, kind: input, shape index: {}]   ;;  %s1461_s2 = inlined_call_operand.vmem [shape: f32[1,32], index: 2, kind: input, shape index: {}]   ;;  %s1462_s3 = inlined_call_operand.vmem [shape: bf16[32,16], index: 3, kind: input, shape index: {}]   ;;  %s1463_s4 = inlined_call_operand.vmem [shape: f32[1,16], index: 4, kind: input, shape index: {}]   ;;  %s1464_s5 = inlined_call_operand.vmem [shape: f32[2,8], index: 5, kind: input, shape index: {}]   ;;  %s1465_s6 = inlined_call_operand.hbm [shape: f32[2,8], index: 6, kind: output, shape index: {0}]   ;;  %s1466_s7 = inlined_call_operand.hbm [shape: f32[1,1], index: 7, kind: output, shape index: {1}]  }
   0x1   :  { %v1080_v0 = vld [vmem:[%s1460_s1 + $0x78] sm:$0xff]   ;;  %v1084_v4 = vld [vmem:[%s1460_s1 + $0x70] sm:$0xff]   ;;  %v1088_v8 = vld [vmem:[%s1460_s1 + $0x68] sm:$0xff]   ;;  %v167_v37 = vunpack.c.l.s4 %v1181_v36 }
   0x2   :  { %v1081_v1 = vld [vmem:[%s1460_s1 + $0xf8] sm:$0xff]   ;;  %972 = vmatprep.subr.bf16.mxu0 %v1080_v0  ;;  %v1085_v5 = vld [vmem:[%s1460_s1 + $0xf0] sm:$0xff]   ;;  %v1089_v9 = vld [vmem:[%s1460_s1 + $0xe8] sm:$0xff]   ;;  %v170_v33 = vshrl.u32 %v169_v28, 7 }
   0x3   :  { %v1082_v2 = vld [vmem:[%s1460_s1 + $0x38] sm:$0xff]   ;;  %994 = vmatprep.subr.bf16.mxu1 %v1081_v1  ;;  %v1086_v6 = vld [vmem:[%s1460_s1 + $0x30] sm:$0xff]   ;;  %v1090_v10 = vld [vmem:[%s1460_s1 + $0x28] sm:$0xff]   ;;  %v168_v40 = vunpack.c.0.s8 %v167_v37 }
   0x4   :  { %v1083_v3 = vld [vmem:[%s1460_s1 + $0xb8] sm:$0xff]   ;;  %973 = vmatpush3.bf16.msra.mxu0 %v1082_v2  ;;  %v1087_v7 = vld [vmem:[%s1460_s1 + $0xb0] sm:$0xff]   ;;  %v1091_v11 = vld [vmem:[%s1460_s1 + $0xa8] sm:$0xff]  }
   0x5   :  { %995 = vmatpush3.bf16.msra.mxu1 %v1083_v3  ;;  %974 = vmatprep.subr.bf16.mxu0 %v1084_v4  ;;  %v1092_v12 = vld [vmem:[%s1460_s1 + $0x60] sm:$0xff]   ;;  %v1096_v16 = vld [vmem:[%s1460_s1 + $0x58] sm:$0xff]   ;;  %v1100_v20 = vld [vmem:[%s1460_s1 + $0x50] sm:$0xff]   ;;  %v1333_v41 = vsub.s32 %v168_v40, %v170_v33 }
   0x6   :  { %996 = vmatprep.subr.bf16.mxu1 %v1085_v5  ;;  %v1093_v13 = vld [vmem:[%s1460_s1 + $0xe0] sm:$0xff]   ;;  %v1097_v17 = vld [vmem:[%s1460_s1 + $0xd8] sm:$0xff]   ;;  %v1101_v21 = vld [vmem:[%s1460_s1 + $0xd0] sm:$0xff]  }
   0x7   :  { %v1094_v14 = vld [vmem:[%s1460_s1 + $0x20] sm:$0xff]   ;;  %v1098_v18 = vld [vmem:[%s1460_s1 + $0x18] sm:$0xff]   ;;  %v1102_v22 = vld [vmem:[%s1460_s1 + $0x10] sm:$0xff]  }
   0x8   :  { %975 = vmatpush3.bf16.msra.mxu0 %v1086_v6  ;;  %v1095_v15 = vld [vmem:[%s1460_s1 + $0xa0] sm:$0xff]   ;;  %v1099_v19 = vld [vmem:[%s1460_s1 + $0x98] sm:$0xff]   ;;  %v1103_v23 = vld [vmem:[%s1460_s1 + $0x90] sm:$0xff]  }
   0x9   :  { %997 = vmatpush3.bf16.msra.mxu1 %v1087_v7  ;;  %976 = vmatprep.subr.bf16.mxu0 %v1088_v8  ;;  %v1104_v24 = vld [vmem:[%s1460_s1 + $0x48] sm:$0xff]   ;;  %v1108_v29 = vld [vmem:[%s1460_s1 + $0x40] sm:$0xff]   ;;  %v1113_v35 = vld [vmem:[%s1460_s1 + $0x178] sm:$0xff]  }
   0xa   :  { %998 = vmatprep.subr.bf16.mxu1 %v1089_v9  ;;  %v1105_v25 = vld [vmem:[%s1460_s1 + $0xc8] sm:$0xff]   ;;  %v1109_v30 = vld [vmem:[%s1460_s1 + $0xc0] sm:$0xff]   ;;  %v1114_v38 = vld [vmem:[%s1460_s1 + $0x1f8] sm:$0xff]  }
   0xb   :  { %v1106_v26 = vld [vmem:[%s1460_s1 + $0x8] sm:$0xff]   ;;  %v1110_v31 = vld [vmem:[%s1460_s1] sm:$0xff]   ;;  %v1115_v47 = vld [vmem:[%s1460_s1 + $0x138] sm:$0xff]  }
   0xc   :  { %977 = vmatpush3.bf16.msra.mxu0 %v1090_v10  ;;  %v1107_v27 = vld [vmem:[%s1460_s1 + $0x88] sm:$0xff]   ;;  %v1111_v32 = vld [vmem:[%s1460_s1 + $0x80] sm:$0xff]   ;;  %v1116_v49 = vld [vmem:[%s1460_s1 + $0x1b8] sm:$0xff]  }
   0xd   :  { %999 = vmatpush3.bf16.msra.mxu1 %v1091_v11  ;;  %978 = vmatprep.subr.bf16.mxu0 %v1092_v12  ;;  %v28_v34 = vld [vmem:[%s1459_s0] sm:$0xff]  ;;  %v1117_v52 = vld [vmem:[%s1460_s1 + $0x170] sm:$0xff]   ;;  %v1121_v58 = vld [vmem:[%s1460_s1 + $0x168] sm:$0xff]  }
   0xe   :  { %1000 = vmatprep.subr.bf16.mxu1 %v1093_v13  ;;  %v165_v39 = vcombine.high %v28_v34, %v28_v34  ;;  %v172_v42 = vrot.slane %v28_v34, %v1333_v41  ;;  %v1118_v54 = vld [vmem:[%s1460_s1 + $0x1f0] sm:$0xff]   ;;  %v1122_v59 = vld [vmem:[%s1460_s1 + $0x1e8] sm:$0xff]   ;;  %v1125_v62 = vld [vmem:[%s1460_s1 + $0x160] sm:$0xff]  }
   0xf   :  { %v1119_v55 = vld [vmem:[%s1460_s1 + $0x130] sm:$0xff]   ;;  %v1123_v60 = vld [vmem:[%s1460_s1 + $0x128] sm:$0xff]   ;;  %v1126_v63 = vld [vmem:[%s1460_s1 + $0x1e0] sm:$0xff]  }
  0x10   :  { %979 = vmatpush3.bf16.msra.mxu0 %v1094_v14  ;;  %v1337_v43 = vrot.slane %v165_v39, %v1333_v41  ;;  %v180_v44 = vcombine.high %v172_v42, %v172_v42  ;;  %v188_v45 = vrot.slane %v172_v42, %v1333_v41  ;;  %v1120_v57 = vld [vmem:[%s1460_s1 + $0x1b0] sm:$0xff]   ;;  %v1124_v61 = vld [vmem:[%s1460_s1 + $0x1a8] sm:$0xff]   ;;  %v1127_v0 = vld [vmem:[%s1460_s1 + $0x120] sm:$0xff]  }
  0x11   :  { %1001 = vmatpush3.bf16.msra.mxu1 %v1095_v15  ;;  %980 = vmatprep.subr.bf16.mxu0 %v1096_v16  ;;  %v1128_v1 = vld [vmem:[%s1460_s1 + $0x1a0] sm:$0xff]   ;;  %v1129_v2 = vld [vmem:[%s1460_s1 + $0x158] sm:$0xff]   ;;  %v1133_v6 = vld [vmem:[%s1460_s1 + $0x150] sm:$0xff]  }
  0x12   :  { %1002 = vmatprep.subr.bf16.mxu1 %v1097_v17  ;;  %v181_v46 = vcombine.high %v1337_v43, %v1337_v43  ;;  %v202_v48 = vrot.slane %v180_v44, %v1333_v41  ;;  %v210_v51 = vcombine.high %v188_v45, %v188_v45  ;;  %v1130_v3 = vld [vmem:[%s1460_s1 + $0x1d8] sm:$0xff]   ;;  %v1134_v7 = vld [vmem:[%s1460_s1 + $0x1d0] sm:$0xff]   ;;  %v1137_v10 = vld [vmem:[%s1460_s1 + $0x148] sm:$0xff]  }
  0x13   :  { %v1131_v4 = vld [vmem:[%s1460_s1 + $0x118] sm:$0xff]   ;;  %v1135_v8 = vld [vmem:[%s1460_s1 + $0x110] sm:$0xff]  }
  0x14   :  { %981 = vmatpush3.bf16.msra.mxu0 %v1098_v18  ;;  %v209_v50 = vrot.slane %v181_v46, %v1333_v41  ;;  %638 = vmatprep.mubr.bf16.mxu0 %v202_v48  ;;  %v212_v53 = vcombine.high %v202_v48, %v202_v48  ;;  %v1132_v5 = vld [vmem:[%s1460_s1 + $0x198] sm:$0xff]   ;;  %v1136_v9 = vld [vmem:[%s1460_s1 + $0x190] sm:$0xff]  }
  0x15   :  { %1003 = vmatpush3.bf16.msra.mxu1 %v1099_v19  ;;  %982 = vmatprep.subr.bf16.mxu0 %v1100_v20 }
  0x16   :  { %1004 = vmatprep.subr.bf16.mxu1 %v1101_v21  ;;  %v213_v56 = vcombine.high %v209_v50, %v209_v50  ;;  %678 = vmatprep.mubr.bf16.mxu1 %v212_v53 }
  0x18   :  { %983 = vmatpush3.bf16.msra.mxu0 %v1102_v22 }
  0x19   :  { %1005 = vmatpush3.bf16.msra.mxu1 %v1103_v23  ;;  %984 = vmatprep.subr.bf16.mxu0 %v1104_v24 }
  0x1a   :  { %1006 = vmatprep.subr.bf16.mxu1 %v1105_v25 }
  0x1c   :  { %985 = vmatpush3.bf16.msra.mxu0 %v1106_v26 }
  0x1d   :  { %1007 = vmatpush3.bf16.msra.mxu1 %v1107_v27  ;;  %986 = vmatprep.subr.bf16.mxu0 %v1108_v29 }
  0x1e   :  { %1008 = vmatprep.subr.bf16.mxu1 %v1109_v30 }
  0x20   :  { %987 = vmatpush3.bf16.msra.mxu0 %v1110_v31 }
  0x21   :  { %1009 = vmatpush3.bf16.msra.mxu1 %v1111_v32  ;;  %1016 = vmatprep.subr.bf16.mxu0 %v1113_v35 }
  0x22   :  { %1038 = vmatprep.subr.bf16.mxu1 %v1114_v38 }
  0x23   :  { %639 = vmatmul.mubr.bf16.vlgmr.msra.gmra.mxu0 %v188_v45 }
  0x24   :  { %1017 = vmatpush3.bf16.msra.mxu0 %v1115_v47  ;;  %679 = vmatmul.mubr.bf16.vlgmr.msra.gmra.mxu1 %v210_v51 }
  0x25   :  { %1018 = vmatprep.subr.bf16.mxu0 %v1117_v52  ;;  %1039 = vmatpush3.bf16.msra.mxu1 %v1116_v49 }
  0x26   :  { %718 = vmatprep.mubr.bf16.mxu0 %v209_v50  ;;  %1040 = vmatprep.subr.bf16.mxu1 %v1118_v54 }
  0x27   :  { %758 = vmatprep.mubr.bf16.mxu1 %v213_v56 }
  0x28   :  { %1019 = vmatpush3.bf16.msra.mxu0 %v1119_v55 }
  0x29   :  { %1020 = vmatprep.subr.bf16.mxu0 %v1121_v58  ;;  %1041 = vmatpush3.bf16.msra.mxu1 %v1120_v57 }
  0x2a   :  { %1042 = vmatprep.subr.bf16.mxu1 %v1122_v59 }
  0x2c   :  { %1021 = vmatpush3.bf16.msra.mxu0 %v1123_v60 }
  0x2d   :  { %1022 = vmatprep.subr.bf16.mxu0 %v1125_v62  ;;  %1043 = vmatpush3.bf16.msra.mxu1 %v1124_v61 }
  0x2e   :  { %1044 = vmatprep.subr.bf16.mxu1 %v1126_v63 }
  0x30   :  { %1023 = vmatpush3.bf16.msra.mxu0 %v1127_v0 }
  0x31   :  { %1024 = vmatprep.subr.bf16.mxu0 %v1129_v2  ;;  %1045 = vmatpush3.bf16.msra.mxu1 %v1128_v1 }
  0x32   :  { %1046 = vmatprep.subr.bf16.mxu1 %v1130_v3 }
  0x34   :  { %1025 = vmatpush3.bf16.msra.mxu0 %v1131_v4 }
  0x35   :  { %1026 = vmatprep.subr.bf16.mxu0 %v1133_v6  ;;  %1047 = vmatpush3.bf16.msra.mxu1 %v1132_v5 }
  0x36   :  { %14 = vsyncpa [#allocation4], 0  ;;  %1048 = vmatprep.subr.bf16.mxu1 %v1134_v7  ;;  %v1138_v11 = vld [vmem:[%s1460_s1 + $0x1c8] sm:$0xff]   ;;  %v1141_v13 = vld [vmem:[%s1460_s1 + $0x140] sm:$0xff]   ;;  %v195_v17 = vrot.slane %v1337_v43, %v1333_v41  ;;  %v1182_v21 = vmov 0.0   ;;  %vm1183_vm0 = vmmov 0  }
  0x37   :  { %v1139_v12 = vld [vmem:[%s1460_s1 + $0x108] sm:$0xff]   ;;  %v1142_v15 = vld [vmem:[%s1460_s1 + $0x1c0] sm:$0xff]   ;;  %vm791_vm1 = vcmask 261120   ;;  %s1184_s18 = smov 8   ;;  %s1185_s19 = smov 120   ;;  %vm848_vm2 = vcmask 58368  }
  0x38   :  { %1027 = vmatpush3.bf16.msra.mxu0 %v1135_v8  ;;  %v1140_v14 = vld [vmem:[%s1460_s1 + $0x188] sm:$0xff]   ;;  %v1143_v16 = vld [vmem:[%s1460_s1 + $0x100] sm:$0xff]   ;;  %v211_v19 = vcombine.high %v195_v17, %v195_v17  ;;  %s1186_s22 = smov [#allocation5]  }
  0x39   :  { %1028 = vmatprep.subr.bf16.mxu0 %v1137_v10  ;;  %1049 = vmatpush3.bf16.msra.mxu1 %v1136_v9  ;;  %v1144_v18 = vld [vmem:[%s1460_s1 + $0x180] sm:$0xff]   ;;  %v1145_v20 = vld [vmem:[%s1462_s3 + $0x8] sm:$0xff]  }
  0x3a   :  { %1050 = vmatprep.subr.bf16.mxu1 %v1138_v11  ;;  %v1146_v22 = vld [vmem:[%s1462_s3] sm:$0xff]  }
  0x3b   :  { %v902_v32 = vld [vmem:[%s1461_s2] ss:$0 sm:$0xff] }
  0x3c   :  { %1029 = vmatpush3.bf16.msra.mxu0 %v1139_v12  ;;  %v967_v50 = vld [vmem:[%s1463_s4] ss:$0 sm:$0xff] }
  0x3d   :  { %1030 = vmatprep.subr.bf16.mxu0 %v1141_v13  ;;  %1051 = vmatpush3.bf16.msra.mxu1 %v1140_v14  ;;  %v837_v2 = vld [vmem:[%s1464_s5] sm:$0x3]  ;;  %s1187_s5 = smov [#allocation2]  }
  0x3e   :  { %1052 = vmatprep.subr.bf16.mxu1 %v1142_v15  ;;  %s881_s0 = sshll.u32 %s1187_s5, 4  ;;  %s882_s0 = int_to_ptr.vmem [resolvable:$true] %s881_s0 }
  0x3f   :  { %s1157_s25 = scalar_lea.vmem %s882_s0, 32  ;;  %p1162_p1 = scmp.lt.s32.totalorder %s882_s0, %s882_s0 }
  0x40   :  { %1031 = vmatpush3.bf16.msra.mxu0 %v1143_v16  ;;  %p1158_p0 = scmp.ne.s32.totalorder %s882_s0, %s1157_s25  ;;  %p1163_p2 = scmp.lt.s32.totalorder %s1157_s25, %s1157_s25 }
  0x41   :  { %1053 = vmatpush3.bf16.msra.mxu1 %v1144_v18  ;;  %1063 = vmatprep.subr.bf16.mxu0 %v1182_v21 }
  0x42   :  { %p1164_p3 = por %p1163_p2, %p1162_p1 }
  0x43   :  { %719 = vmatmul.mubr.bf16.vlgmr.msra.gmra.mxu0 %v195_v17 }
  0x44   :  { %759 = vmatmul.mubr.bf16.vlgmr.msra.gmra.mxu1 %v211_v19  ;;  %1064 = vmatpush3.bf16.msra.mxu0 %v1145_v20  ;;  %p1165_p4 = pnand %p1164_p3, %p1158_p0 }
  0x45   :  { %1065 = vmatprep.subr.bf16.mxu0 %v1182_v21  ;;  %1067 = vmatprep.mubr.msk.bf16.mxu0 %vm1183_vm0, %v1182_v21 }
  0x48   :  { %1066 = vmatpush3.bf16.msra.mxu0 %v1146_v22 }
  0xe3   :  { %v988_v23 = vpop.f32.mrf.mxu0 }
  0xe4   :  { %v1010_v24 = vpop.f32.mrf.mxu1 }
  0xe5   :  { %v989_v25 = vpop.f32.mrf.mxu0 }
  0xe6   :  { %v1011_v26 = vpop.f32.mrf.mxu1  ;;  %v990_v31 = vadd.f32 %v989_v25, %v988_v23 }
  0xe7   :  { %v991_v27 = vpop.f32.mrf.mxu0  ;;  %v1012_v34 = vadd.f32 %v1011_v26, %v1010_v24 }
  0xe8   :  { %v1013_v28 = vpop.f32.mrf.mxu1  ;;  %v641_v33 = vadd.f32 %v990_v31, %v902_v32 }
  0xe9   :  { %v992_v29 = vpop.f32.mrf.mxu0 }
  0xea   :  { %v1014_v30 = vpop.f32.mrf.mxu1  ;;  %v681_v38 = vadd.f32 %v1012_v34, %v641_v33 }
 0x103   :  { %v1032_v35 = vpop.f32.mrf.mxu0 }
 0x104   :  { %v1054_v36 = vpop.f32.mrf.mxu1 }
 0x105   :  { %v1033_v37 = vpop.f32.mrf.mxu0 }
 0x106   :  { %v1034_v39 = vadd.f32 %v1033_v37, %v1032_v35  ;;  %v1055_v40 = vpop.f32.mrf.mxu1 }
 0x107   :  { %v1035_v41 = vpop.f32.mrf.mxu0  ;;  %v1056_v43 = vadd.f32 %v1055_v40, %v1054_v36 }
 0x108   :  { %v721_v42 = vadd.f32 %v1034_v39, %v681_v38  ;;  %v1057_v44 = vpop.f32.mrf.mxu1 }
 0x109   :  { %v1036_v45 = vpop.f32.mrf.mxu0 }
 0x10a   :  { %v761_v46 = vadd.f32 %v1056_v43, %v721_v42  ;;  %v1058_v47 = vpop.f32.mrf.mxu1 }
 0x10c   :  { %v766_v48 = vmax.f32 %v761_v46, 0.0 }
 0x10e   :  { %v767_v49 = vpack.c.bf16 %v766_v48, %v766_v48 }
 0x110   :  { %1068 = vmatmul.mubr.msk.bf16.vlgmr.msra.gmra.mxu0 %vm791_vm1, %v767_v49 }
 0x1d0   :  { %v829_v51 = vpop.f32.mrf.mxu0 }
 0x1d1   :  { %v830_v52 = vadd.f32 %v967_v50, %v829_v51 }
 0x1d2   :  { %v1069_v53 = vpop.f32.mrf.mxu0 }
 0x1d3   :  { %v851_v54 = vmul.f32 %v830_v52, %v830_v52  ;;  %v835_v57 = vmul.f32 1.442695, %v830_v52 }
 0x1d4   :  { %v832_v55 = vpop.f32.mrf.mxu0 }
 0x1d5   :  { %853 = vrot.lane.b32.xlu0 %v851_v54, %s1184_s18  ;;  %1147 = vpow2.f32 %v835_v57 }
 0x1d6   :  { %v1070_v56 = vpop.f32.mrf.mxu0 }
 0x1e2   :  { %v1148_v58 = vpop.eup %1147 }
 0x1e3   :  { %v850_v59 = vmul.f32 %v1148_v58, %v1148_v58 }
 0x247   :  { %v854_v60 = vpop.permute.xlu0 %853 }
 0x248   :  { %v856_v61 = vadd.f32 %v854_v60, %v850_v59 }
 0x24a   :  { %v857_v62 = vsub.f32 %v856_v61, %v830_v52 }
 0x24c   :  { %v971_v63 = vadd.f32 -0.5, %v857_v62 }
 0x24e   :  { %860 = vrot.lane.b32.xlu0 %v971_v63, %s1185_s19 }
 0x2c0   :  { %v861_v0 = vpop.permute.xlu0 %860 }
 0x2c1   :  { %v863_v1 = vsel %vm848_vm2, %v861_v0, 0.0 }
 0x2c2   :  { %864 = vadd.xlane.f32.xlu1 %v863_v1 }
 0x2d3   :  { %839 = vrot.lane.b32.xlu1 %v837_v2, %s1184_s18 }
 0x34b   :  { %v865_v3 = vpop.xlane.xlu1 %864 }
 0x34c   :  { %v866_v4 = vrot.slane %v865_v3, 4 }
 0x34e   :  { %v867_v5 = vadd.f32 %v866_v4, %v865_v3 }
 0x34f   :  { %v840_v6 = vpop.permute.xlu1 %839 }
 0x350   :  { %v868_v7 = vrot.slane %v867_v5, 2  ;;  %v842_v8 = vmul.f32 %v1148_v58, %v840_v6 }
 0x352   :  { %844 = vrot.lane.b32.xlu0 %v842_v8, %s1185_s19  ;;  %v869_v9 = vadd.f32 %v868_v7, %v867_v5 }
 0x354   :  { %v870_v10 = vrot.slane %v869_v9, 1 }
 0x356   :  { %v871_v11 = vadd.f32 %v870_v10, %v869_v9 }
 0x358   :  { %1071 = vpush %v871_v11 }
 0x389   :  { %s1072_s21 = spop %1071 }
 0x38a   :  { %874 = sst [smem:[#allocation5]] %s1072_s21 }
 0x38b   :  { %892 = dma.smem_to_hbm %s1186_s22, 16, %s1466_s7, [#allocation4]  }
 0x3c4   :  { %v845_v12 = vpop.permute.xlu0 %844 }
 0x3c5   :  { %v847_v13 = vadd.f32 %v845_v12, %v830_v52 }
 0x3c7   :  { %849 = vst.msk [vmem:[#allocation2] sm:$0x3] %vm848_vm2, %v847_v13 }
 0x3c8   :  { %1168 = shalt.err (!%p1165_p4)
}
 0x3c9   :  { %884 = dma.vmem_to_hbm [thread:$0]  %s882_s0, 32, %s1465_s6, [#allocation3]  }
 0x3ca   :  { %1177 = dma.done.wait [#allocation3], 32  }
 0x3cb   :  { %1178 = vsyncadd [#allocation3], 4294967264 }
 0x3cc   :  { %1179 = dma.done.wait [#allocation4], 16  }
 0x3cd   :  { %1180 = vsyncadd [#allocation4], 4294967280 }
 0x3ce   :  { %899 = sfence }
 0x3cf   :  { %900 = vsyncpa [#allocation3], 1 }
 0x3d0   :  { %901 = vsyncpa [#allocation4], 1 }

</bundles_post_ra>
